<compile_context>
chip_gen: v5e
topology: v5e:2x2
jax: 0.10.0
libtpu: 0.0.40
codegen_flags: <defaults>
</compile_context>

<pallas_src>
import functools
import math

import jax
import jax.numpy as jnp
from jax.experimental import pallas as pl
from jax.experimental.pallas import tpu as pltpu


def _round_up(x, m):
    return ((x + m - 1) // m) * m


def _vmem_capacity_bytes():
    """Physical VMEM per TensorCore; conservative 64 MiB (v7x) fallback."""
    try:
        info = pltpu.get_tpu_info()
        cap = int(getattr(info, "vmem_capacity_bytes", 0) or 0)
        if cap > 0:
            return cap
    except Exception:
        pass
    return 64 * 1024 * 1024


def gcn_kernel(adj_ref, hidden_ref, bias_ref, out_ref, *, out_f):
    """Grid = (batch, row_tile); both axes parallel.

    adj_ref    : (TM, N)      VMEM, native dtype (cast to compute dtype here)
    hidden_ref : (N, out_fh)  VMEM, compute dtype; lane `out_f` holds ones
    bias_ref   : (1, out_f)   VMEM, f32
    out_ref    : (TM, out_f)  VMEM
    """
    # Per-tile cast in VMEM (one VPU pass, hidden under the adj DMA).
    adj = adj_ref[...].astype(hidden_ref.dtype)

    # Single MXU matmul; the ones lane of `hidden` makes acc[:, out_f] equal to
    # the adjacency row-sum, so the denominator is free.
    acc = jnp.dot(adj, hidden_ref[...], preferred_element_type=jnp.float32)

    denom = acc[:, out_f:out_f + 1] + 1.0
    inv = pl.reciprocal(denom, approx=True)          # EUP slot
    out = acc[:, :out_f] * inv + bias_ref[...]
    out_ref[...] = out.astype(out_ref.dtype)


def _choose_row_tile(n, out_fh, out_f, adj_itemsize, cb, ob, vmem_clamp):
    """Largest power-of-two row tile whose residency fits the VMEM clamp:
    2 x TM x N adj (double-buffered, native dtype) + 2 x N x out_fh hidden
    + 2 x TM x out_f output tiles + headroom."""
    fixed = 2 * n * out_fh * cb + 2 * out_f * 4          # hidden + bias
    per_row = 2 * n * adj_itemsize + 2 * out_f * ob      # adj + out (dbl-buffered)
    avail = max(vmem_clamp - fixed - (4 << 20), 8 * per_row)
    tm = 1024
    while tm > 8 and tm * per_row > avail:
        tm //= 2
    if tm >= n:
        return n        # single full-height tile (also covers N not % 8)
    return tm           # power of two >= 8 -> satisfies the sublane-8 rule


@functools.partial(jax.jit, static_argnames=("compute_dtype",))
def graph_convolution(text, adj, weight, bias, *, compute_dtype=jnp.bfloat16):
    B, N, in_f = text.shape
    out_f = weight.shape[1]
    out_dtype = text.dtype
    cb = jnp.dtype(compute_dtype).itemsize
    ob = jnp.dtype(out_dtype).itemsize
    ab = jnp.dtype(adj.dtype).itemsize   # adj streamed in its native dtype

    # hidden = text @ W, padded so lane `out_f` carries a column of ones.
    # This is O(N*in_f*out_f) -- tiny next to the O(N^2*out_f) aggregation the
    # kernel performs -- and keeps both grid axes parallel.
    out_fh = _round_up(out_f + 1, 128)
    w_pad = jnp.pad(weight.astype(jnp.float32), ((0, 0), (0, out_fh - out_f)))
    hidden = jnp.matmul(text.astype(jnp.float32), w_pad)
    hidden = hidden.at[..., out_f].set(1.0).astype(compute_dtype)

    bias2d = bias.astype(jnp.float32).reshape(1, out_f)

    # TODO(synk): if adj is binary / low dynamic range and reused across layers,
    # materialize it once upstream in int8 (or fp8 on v7x) to halve the dominant
    # HBM stream; data-dependent, so not done here.

    # Chip-aware scoped-VMEM clamp: ~100 MiB on 128 MiB parts, ~48 MiB on v7x.
    vmem_cap = _vmem_capacity_bytes()
    vmem_clamp = (100 << 20) if vmem_cap >= (100 << 20) else (48 << 20)

    tm = _choose_row_tile(N, out_fh, out_f, ab, cb, ob, vmem_clamp)
    n_row_tiles = pl.cdiv(N, tm)

    vmem_est = (2 * tm * N * ab          # adj row tile, double-buffered
                + 2 * N * out_fh * cb    # per-batch hidden block
                + 2 * out_f * 4          # bias
                + 2 * tm * out_f * ob)   # output tile
    vmem_limit = int(min(max(vmem_est + (4 << 20), 16 << 20), vmem_clamp))

    cost = pl.CostEstimate(
        flops=2 * B * N * N * out_fh,
        transcendentals=B * N,
        bytes_accessed=(adj.size * ab + hidden.size * cb
                        + bias2d.size * 4 + B * N * out_f * ob),
    )

    kernel = functools.partial(gcn_kernel, out_f=out_f)

    return pl.pallas_call(
        kernel,
        out_shape=jax.ShapeDtypeStruct((B, N, out_f), out_dtype),
        grid_spec=pltpu.PrefetchScalarGridSpec(
            num_scalar_prefetch=0,
            grid=(B, n_row_tiles),       # row-tile axis innermost
            in_specs=[
                # adjacency row tile in its native dtype (cast in-kernel)
                pl.BlockSpec((pl.Squeezed(), tm, N), lambda b, r: (b, r, 0)),
                # per-batch hidden (constant over r -> fetched once per b)
                pl.BlockSpec((pl.Squeezed(), N, out_fh), lambda b, r: (b, 0, 0)),
                # bias resident for the whole grid
                pl.BlockSpec((1, out_f), lambda b, r: (0, 0)),
            ],
            out_specs=pl.BlockSpec((pl.Squeezed(), tm, out_f),
                                   lambda b, r: (b, r, 0)),
        ),
        compiler_params=pltpu.CompilerParams(
            # No cross-iteration state -> both axes can be parallel (megacore
            # sharding on v7x works even when B == 1).
            dimension_semantics=("parallel", "parallel"),
            vmem_limit_bytes=vmem_limit,
        ),
        cost_estimate=cost,
    )(adj, hidden, bias2d)


def init_params(key, in_features, out_features):
    """Deterministic parameter init matching the PyTorch module:
    - weight: xavier_uniform -> U(-sqrt(6/(fan_in+fan_out)), +...)
    - bias:   U(-1/sqrt(out_features), +1/sqrt(out_features))
    """
    kw, kb = jax.random.split(key)
    bound_w = math.sqrt(6.0 / (in_features + out_features))
    weight = jax.random.uniform(
        kw, (in_features, out_features), jnp.float32, -bound_w, bound_w)
    stdv = 1.0 / math.sqrt(out_features)
    bias = jax.random.uniform(kb, (out_features,), jnp.float32, -stdv, stdv)
    return weight, bias


def graph_convolution_ref(text, adj, weight, bias):
    hidden = jnp.matmul(text, weight)
    denom = jnp.sum(adj, axis=2, keepdims=True) + 1.0
    return jnp.matmul(adj, hidden) / denom + bias


if __name__ == "__main__":
    key = jax.random.PRNGKey(0)
    k_text, k_adj, k_param = jax.random.split(key, 3)

    B, N = 2, 8
    in_features, out_features = 16, 32

    text = jax.random.normal(k_text, (B, N, in_features), jnp.float32)
    adj = jax.random.uniform(k_adj, (B, N, N), jnp.float32)
    weight, bias = init_params(k_param, in_features, out_features)

    out = graph_convolution(text, adj, weight, bias)
    out = jax.block_until_ready(out)

    ref = graph_convolution_ref(text, adj, weight, bias)
    assert out.shape == (B, N, out_features)
    # bf16 MXU operands (adj cast in-kernel, hidden precomputed in bf16) plus
    # the approximate EUP reciprocal -> relaxed tolerance vs the f32 reference.
    assert jnp.allclose(out, ref, atol=5e-2, rtol=5e-2), "mismatch vs reference"

    print("KERNEL_OK")
</pallas_src>

<mosaic_0001>
module attributes {stable_mosaic.version = 11 : i64} {
  func.func @gcn_kernel(%arg0: i32, %arg1: i32, %arg2: memref<1x8x8xf32, #tpu.memory_space<vmem>>, %arg3: memref<1x8x128xbf16, #tpu.memory_space<vmem>>, %arg4: memref<1x32xf32, #tpu.memory_space<vmem>>, %arg5: memref<1x8x32xf32, #tpu.memory_space<vmem>>) attributes {dimension_semantics = [#tpu.dimension_semantics<parallel>, #tpu.dimension_semantics<parallel>], iteration_bounds = array<i64: 2, 1>, scalar_prefetch = 0 : i64, scratch_operands = 0 : i64, tpu.core_type = #tpu.core_type<tc>, window_params = [{transform_indices = @transform_0, window_bounds = array<i64: 1, 8, 8>}, {transform_indices = @transform_1, window_bounds = array<i64: 1, 8, 128>}, {pipeline_mode = #tpu.pipeline_mode<synchronous>, transform_indices = @transform_2, window_bounds = array<i64: 1, 32>}, {transform_indices = @transform_3, window_bounds = array<i64: 1, 8, 32>}]} {
    %c0 = arith.constant 0 : index
    %c0_0 = arith.constant 0 : index
    %c0_1 = arith.constant 0 : index
    %0 = vector.load %arg2[%c0, %c0_0, %c0_1] : memref<1x8x8xf32, #tpu.memory_space<vmem>>, vector<1x8x8xf32>
    %1 = vector.shape_cast %0 : vector<1x8x8xf32> to vector<8x8xf32>
    %2 = arith.truncf %1 : vector<8x8xf32> to vector<8x8xbf16>
    %c0_2 = arith.constant 0 : index
    %c0_3 = arith.constant 0 : index
    %c0_4 = arith.constant 0 : index
    %3 = vector.load %arg3[%c0_2, %c0_3, %c0_4] : memref<1x8x128xbf16, #tpu.memory_space<vmem>>, vector<1x8x128xbf16>
    %4 = vector.shape_cast %3 : vector<1x8x128xbf16> to vector<8x128xbf16>
    %cst = arith.constant dense<0.000000e+00> : vector<8x128xf32>
    %5 = tpu.matmul %2, %4, %cst {dimension_numbers = #tpu.dot_dimension_numbers<[1], [0], [0], [1], [0, 0, 1, 1], [], []>} : vector<8x8xbf16>, vector<8x128xbf16>, vector<8x128xf32> -> vector<8x128xf32>
    %6 = vector.extract_strided_slice %5 {offsets = [0, 32], sizes = [8, 1], strides = [1, 1]} : vector<8x128xf32> to vector<8x1xf32>
    %cst_5 = arith.constant 1.000000e+00 : f32
    %7 = vector.broadcast %cst_5 : f32 to vector<8x1xf32>
    %8 = arith.addf %6, %7 : vector<8x1xf32>
    %9 = tpu.reciprocal %8 {approx = true} : vector<8x1xf32> -> vector<8x1xf32>
    %10 = vector.extract_strided_slice %5 {offsets = [0, 0], sizes = [8, 32], strides = [1, 1]} : vector<8x128xf32> to vector<8x32xf32>
    %11 = vector.broadcast %9 : vector<8x1xf32> to vector<8x32xf32>
    %12 = arith.mulf %10, %11 : vector<8x32xf32>
    %c0_6 = arith.constant 0 : index
    %c0_7 = arith.constant 0 : index
    %13 = vector.load %arg4[%c0_6, %c0_7] : memref<1x32xf32, #tpu.memory_space<vmem>>, vector<1x32xf32>
    %14 = vector.broadcast %13 : vector<1x32xf32> to vector<8x32xf32>
    %15 = arith.addf %12, %14 : vector<8x32xf32>
    %c0_8 = arith.constant 0 : index
    %c0_9 = arith.constant 0 : index
    %c0_10 = arith.constant 0 : index
    %16 = vector.load %arg5[%c0_8, %c0_9, %c0_10] : memref<1x8x32xf32, #tpu.memory_space<vmem>>, vector<1x8x32xf32>
    %17 = vector.shape_cast %16 : vector<1x8x32xf32> to vector<8x32xf32>
    %18 = vector.shape_cast %15 : vector<8x32xf32> to vector<1x8x32xf32>
    tpu.vector_store %arg5[%c0_8, %c0_9, %c0_10], %18 {strides = array<i32>} : memref<1x8x32xf32, #tpu.memory_space<vmem>>, vector<1x8x32xf32>,
    return
  }
  func.func @transform_0(%arg0: i32, %arg1: i32) -> (i32, i32, i32) {
    %c0_i32 = arith.constant 0 : i32
    %c0_i32_0 = arith.constant 0 : i32
    return %arg0, %arg1, %c0_i32 : i32, i32, i32
  }
  func.func @transform_1(%arg0: i32, %arg1: i32) -> (i32, i32, i32) {
    %c0_i32 = arith.constant 0 : i32
    %c0_i32_0 = arith.constant 0 : i32
    %c0_i32_1 = arith.constant 0 : i32
    return %arg0, %c0_i32, %c0_i32_0 : i32, i32, i32
  }
  func.func @transform_2(%arg0: i32, %arg1: i32) -> (i32, i32) {
    %c0_i32 = arith.constant 0 : i32
    %c0_i32_0 = arith.constant 0 : i32
    %c0_i32_1 = arith.constant 0 : i32
    return %c0_i32, %c0_i32_0 : i32, i32
  }
  func.func @transform_3(%arg0: i32, %arg1: i32) -> (i32, i32, i32) {
    %c0_i32 = arith.constant 0 : i32
    %c0_i32_0 = arith.constant 0 : i32
    return %arg0, %arg1, %c0_i32 : i32, i32, i32
  }
}

</mosaic_0001>

<bundles_post_ra>
// kernel: graph_convolution.1
= control target key start
LH: loop header
LB: loop body
LE: loop exit
PB: predicated region body
PF: predicated region fallthrough
CT: control target
= control target key end

     0   :  { %8 = vsyncpa [#allocation3], 0  ;;  %s625_s0 = inlined_call_operand.vmem [shape: f32[2,8,8], index: 0, kind: input, shape index: {}]   ;;  %s626_s1 = inlined_call_operand.vmem [shape: bf16[2,8,128], index: 1, kind: input, shape index: {}]   ;;  %s627_s2 = inlined_call_operand.vmem [shape: f32[1,32], index: 2, kind: input, shape index: {}]   ;;  %s628_s3 = inlined_call_operand.hbm [shape: f32[2,8,32], index: 3, kind: output, shape index: {}]  }
   0x1   :  { %10 = vsyncpa [#allocation3 + $0x1], 0  ;;  %s522_s12 = smov 0   ;;  %s524_s13 = smov 0  }
   0x2   :  { %s526_s14 = smov 0   ;;  %s528_s15 = smov 0  }
   0x3   :  { %s530_s16 = smov 0   ;;  %s532_s17 = smov 0  }
   0x4 LB: > { %s348_s18 = sadd.s32 4294967295, %s499_s17   ;;  %s349_s19 = sadd.s32 4294967294, %s499_s17   ;;  %s499_s17 = sphi %s532_s17, %s16_s17   ;;  %s495_s16 = sphi %s530_s16, %s635_s16   ;;  %s491_s15 = sphi %s528_s15, %s634_s15   ;;  %s487_s14 = sphi %s526_s14, %s633_s14   ;;  %s483_s13 = sphi %s524_s13, %s632_s13   ;;  %s479_s12 = sphi %s522_s12, %s631_s12  }
   0x5   : > { %s28_s20 = sadd.s32 1, %s495_s16  ;;  %s112_s21 = sadd.s32 1, %s487_s14 }
   0x6   : > { %p30_p0 = scmp.ge.s32.totalorder %s28_s20, 2  ;;  %p122_p1 = scmp.ne.s32.totalorder %s487_s14, %s483_s13 }
   0x7   : > { %p123_p2 = scmp.eq.s32.totalorder %s348_s18, 1  ;;  %p128_p3 = scmp.ne.s32.totalorder %s483_s13, %s479_s12 }
   0x8   : > { %s637_s20 = smov (%p30_p0, %s28_s20), 0  ;;  %p129_p5 = scmp.eq.s32.totalorder %s349_s19, 1 }
   0x9   : > { %p562_p4 = por %p123_p2, %p122_p1  ;;  %s107_s23 = ssub.s32 %s495_s16, %s637_s20 }
   0xa   : > { %p352_p6 = scmp.ge.s32.totalorder %s499_s17, 1  ;;  %p110_p7 = scmp.eq.s32.totalorder %s107_s23, 0 }
   0xb   : > { %p569_p8 = por %p129_p5, %p128_p3  ;;  %p167_p9 = scmp.lt.s32.totalorder %s499_s17, 3 }
   0xc   : > { %s575_s25 = scalar_select %p110_p7, %s487_s14, %s112_s21  }
   0xd   : > { %p168_p10 = pnand %p352_p6, %p167_p9 }
   0xe   : > { %p197_p11 = scmp.lt.s32.totalorder (!%p168_p10), %s491_s15, 1  ;;  %s194_s8 = sand.u32 (!%p168_p10), 1, %s483_s13  }
   0xf   : > { %171 = sbr.rel (%p168_p10) target bundleno = 286 (0x11e), region = 32  ;;  %s353_s9 = sshll.u32 (!%p168_p10), %s194_s8, 3 }
  0x10   : > { %s358_s10 = sshll.u32 (!%p168_p10), %s491_s15, 3  ;;  %s441_s6 = scalar_lea.hbm (!%p168_p10), %s628_s3, 16 }
  0x11   : > { %s260_s19 = scalar_lea.hbm (!%p168_p10), %s628_s3, %s358_s10 }
  0x14   : > { %s198_s26 = scalar_select %p197_p11, %s491_s15, 1  ;;  %vm216_vm0 = vcmask 1043456   ;;  %vm212_vm1 = vcmask 64512   ;;  %v501_v4 = vmov 32   ;;  %v418_v9 = vld [vmem:[%s627_s2] ss:$0 sm:$0xff] }
  0x15   : > { %417 = vset.pattern.permute.xlu0 %v501_v4  ;;  %vm246_vm2 = vcmask 261120   ;;  %s249_s15 = scalar_lea.sflag [#allocation3], %s194_s8 }
  0x16   : > { %s355_s27 = sshll.u32 %s198_s26, 2  ;;  %s354_s28 = sshll.u32 %s198_s26, 3 }
  0x17   : > { %s207_s4 = scalar_lea.vmem %s626_s1, %s355_s27  ;;  %s203_s7 = scalar_lea.vmem %s625_s0, %s354_s28 }
  0x18   : > { %v211_v0 = vld [vmem:[%s207_s4] sm:$0xf]  ;;  %s196_s26 = scalar_lea.vmem [#allocation2], %s353_s9  ;;  %s264_s28 = sshll.u32 %s260_s19, 4  ;;  %s265_s28 = int_to_ptr.hbm [resolvable:$true] %s264_s28 }
  0x19   : > { %v209_v1 = vld [vmem:[%s203_s7] sm:$0xff]  ;;  %v218_v2 = vsel %vm216_vm0, %v211_v0, 0  ;;  %s262_s27 = sshll.u32 %s196_s26, 4  ;;  %s435_s29 = sshra.s32 %s265_s28, 4  ;;  %s263_s27 = int_to_ptr.vmem [resolvable:$true] %s262_s27  ;;  %s436_s29 = int_to_ptr.hbm [resolvable:$true] %s435_s29 }
  0x1a   : > { %v210_v3 = vpack.c.bf16 %v209_v1, %v209_v1  ;;  %227 = vmatpush.bf16.msra.mxu0 %v218_v2  ;;  %s437_s30 = scalar_lea.hbm %s436_s29, 8  ;;  %p442_p1 = scmp.lt.s32.totalorder %s436_s29, %s628_s3 }
  0x1b   : > { %p438_p12 = scmp.ne.s32.totalorder %s436_s29, %s437_s30  ;;  %p443_p2 = scmp.lt.s32.totalorder %s441_s6, %s437_s30 }
  0x1d   : > { %356 = vmatmul.msk.bf16.vlgmr.msra.gmra.mxu0 %vm212_vm1, %v210_v3  ;;  %p439_p13 = pnand %p438_p12, %p562_p4  ;;  %p444_p3 = por %p443_p2, %p442_p1 }
  0x1f   : > { %p440_p0 = pneg %p439_p13 }
  0x21   : > { %p445_p5 = pnand %p444_p3, %p440_p0 }
  0x9a   : > { %v229_v5 = vpop.f32.mrf.mxu0 }
  0x9b   : > { %v233_v6 = vadd.f32 1.0, %v229_v5 }
  0x9d   : > { %419 = vrcp.f32 %v233_v6 }
  0xa2   : > { %v231_v7 = vpop.f32.mrf.mxu0 }
  0xa3   : > { %v420_v8 = vpop.eup %419 }
  0xa4   : > { %237 = vperm.xlu0 %417, %v420_v8  }
 0x116   : > { %v238_v10 = vpop.permute.xlu0 %237 }
 0x117   : > { %v240_v11 = vmul.f32 %v238_v10, %v229_v5 }
 0x119   : > { %v245_v12 = vadd.f32 %v418_v9, %v240_v11 }
 0x11b   : > { %247 = vst.msk [vmem:[%s196_s26] sm:$0xff] %vm246_vm2, %v245_v12 }
 0x11c   : > { %448 = shalt.err (!%p445_p5)
}
 0x11d   : > { %361 = dma.vmem_to_hbm [thread:$0]  (%p562_p4), %s263_s27, 128, %s265_s28, %s249_s15  }
 0x11e PF: > { %p367_p6 = scmp.ge.s32.totalorder %s499_s17, 2  ;;  %s276_s8 = sand.u32 1, %s479_s12  }
 0x11f   : > { %s277_s10 = scalar_lea.sflag [#allocation3], %s276_s8 }
 0x120   : > { %p364_p7 = pnand %p367_p6, %p569_p8 }
 0x122   : > { %p365_p9 = pneg %p364_p7 }
 0x124   : > { %474 = dma.done.wait (%p365_p9), %s277_s10, 128  }
 0x125   : > { %476 = vsyncadd (%p365_p9), %s277_s10, 4294967168  ;;  %s16_s17 = sadd.s32 1, %s499_s17   ;;  %s631_s12 = smov %s483_s13 }
 0x126   : > { %p13_p10 = scmp.ge.s32.totalorder %s16_s17, 4   ;;  %s632_s13 = smov %s487_s14 }
 0x127   : > { %s633_s14 = smov %s575_s25  ;;  %s634_s15 = smov %s495_s16 }
 0x128   : > { %s635_s16 = smov %s637_s20  ;;  %15 = sbr.rel (!%p13_p10) target bundleno = 4 (0x4), region = 70 }
 0x12d   :  { %283 = vsyncpa [#allocation3], 1 }
 0x12e   :  { %285 = vsyncpa [#allocation3 + $0x1], 1 }

</bundles_post_ra>
